<compile_context>
chip_gen: v5e
topology: v5e:2x2
jax: 0.10.0
libtpu: 0.0.40
codegen_flags: <defaults>
</compile_context>

<pallas_src>
import jax
import jax.numpy as jnp
import numpy as np
from jax.experimental import pallas as pl
from jax.experimental.pallas import tpu as pltpu


def _elmo_identity_kernel(x_ref, o_ref):
    # Empty forward => no transformation of the data.  Keep the body a pure
    # copy (no reshapes/slices) so v5e's single store slot is not wasted.
    o_ref[...] = x_ref[...]


def _choose_lane_dim(total: int) -> int:
    """Largest lane-dense last dim (multiple of 128) that divides `total`."""
    for lane in (4096, 2048, 1024, 512, 256, 128):
        if total % lane == 0:
            return lane
    return 0  # no multiple of 128 divides total -> single full-array block


def _pick_tile_rows(rows: int, lane: int, itemsize: int,
                    max_tile_bytes: int = 2 * 1024 * 1024) -> int:
    """Largest row-tile <= ~2 MiB that keeps every block full (unmasked stores)."""
    cap = max(1, max_tile_bytes // max(1, lane * itemsize))
    if cap >= rows:
        return rows  # single block covering the whole array
    # Multi-block case: tile_rows must divide rows and be a multiple of 8 so
    # the (8, 128) block constraint is satisfied.
    t = (cap // 8) * 8
    while t >= 8:
        if rows % t == 0:
            return t
        t -= 8
    return rows  # fall back to one full-array block


def elmo_forward(x_nchw: jax.Array) -> jax.Array:
    """Pallas implementation of ELMO.forward semantics (a no-op identity)."""
    orig_shape = x_nchw.shape
    total = x_nchw.size
    itemsize = jnp.dtype(x_nchw.dtype).itemsize

    lane = _choose_lane_dim(total)
    if lane == 0:
        rows, lane = 1, total  # block == full array dims (exempt from 8x128 rule)
    else:
        rows = total // lane

    x2d = x_nchw.reshape(rows, lane)

    tile_rows = _pick_tile_rows(rows, lane, itemsize)
    grid = (rows // tile_rows,)

    out2d = pl.pallas_call(
        _elmo_identity_kernel,
        out_shape=jax.ShapeDtypeStruct((rows, lane), x2d.dtype),
        grid_spec=pltpu.PrefetchScalarGridSpec(
            num_scalar_prefetch=0,
            grid=grid,
            in_specs=[pl.BlockSpec((tile_rows, lane), lambda i: (i, 0))],
            out_specs=pl.BlockSpec((tile_rows, lane), lambda i: (i, 0)),
        ),
        compiler_params=pltpu.CompilerParams(
            dimension_semantics=("parallel",),  # lets v7x shard across its 2 TCs
            vmem_limit_bytes=32 * 1024 * 1024,  # explicit; tiles are <= 2 MiB each
        ),
        # Identity op: alias output onto the input buffer — no separate output
        # allocation / HBM round-trip where XLA can honor the donation.
        input_output_aliases={0: 0},
    )(x2d)

    return out2d.reshape(orig_shape)


if __name__ == "__main__":
    key = jax.random.PRNGKey(0)
    # Small synthetic NCHW input consistent with a conv-style module.
    x = jax.random.normal(key, (2, 4, 16, 16), dtype=jnp.float32)

    # Snapshot to host BEFORE the call: the aliased (donated) pallas_call may
    # invalidate the device buffer backing the input.
    x_host = np.asarray(jax.device_get(x))

    y = elmo_forward(x)
    jax.block_until_ready(y)

    # The empty forward implies the data is untouched; sanity-check identity.
    assert y.shape == x_host.shape
    assert np.array_equal(np.asarray(jax.device_get(y)), x_host)

    print("KERNEL_OK")
</pallas_src>

<mosaic_0001>
module attributes {stable_mosaic.version = 11 : i64} {
  func.func @_elmo_identity_kernel(%arg0: i32, %arg1: memref<1x2048xf32, #tpu.memory_space<vmem>>, %arg2: memref<1x2048xf32, #tpu.memory_space<vmem>>) attributes {dimension_semantics = [#tpu.dimension_semantics<parallel>], iteration_bounds = array<i64: 1>, scalar_prefetch = 0 : i64, scratch_operands = 0 : i64, tpu.core_type = #tpu.core_type<tc>, window_params = [{transform_indices = @transform_0, window_bounds = array<i64: 1, 2048>}, {transform_indices = @transform_1, window_bounds = array<i64: 1, 2048>}]} {
    %c0 = arith.constant 0 : index
    %c0_0 = arith.constant 0 : index
    %0 = vector.load %arg1[%c0, %c0_0] : memref<1x2048xf32, #tpu.memory_space<vmem>>, vector<1x2048xf32>
    %c0_1 = arith.constant 0 : index
    %c0_2 = arith.constant 0 : index
    %1 = vector.load %arg2[%c0_1, %c0_2] : memref<1x2048xf32, #tpu.memory_space<vmem>>, vector<1x2048xf32>
    tpu.vector_store %arg2[%c0_1, %c0_2], %0 {strides = array<i32>} : memref<1x2048xf32, #tpu.memory_space<vmem>>, vector<1x2048xf32>,
    return
  }
  func.func @transform_0(%arg0: i32) -> (i32, i32) {
    %c0_i32 = arith.constant 0 : i32
    %c0_i32_0 = arith.constant 0 : i32
    return %arg0, %c0_i32 : i32, i32
  }
  func.func @transform_1(%arg0: i32) -> (i32, i32) {
    %c0_i32 = arith.constant 0 : i32
    %c0_i32_0 = arith.constant 0 : i32
    return %arg0, %c0_i32 : i32, i32
  }
}

</mosaic_0001>

<bundles_post_ra>
// kernel: tpu_custom_call.1
= control target key start
LH: loop header
LB: loop body
LE: loop exit
PB: predicated region body
PF: predicated region fallthrough
CT: control target
= control target key end

     0   :  { %6 = vsyncpa [#allocation3], 0  ;;  %s116_s0 = inlined_call_operand.hbm [shape: f32[1,2048], index: 0, kind: input, shape index: {}, may-alias: {0,1}]   ;;  %s117_s1 = inlined_call_operand.hbm [shape: f32[1,2048], index: 1, kind: output, shape index: {}, may-alias: {0,1}]  }
   0x1   :  { %7 = vsyncpa [#allocation4], 0  ;;  %s13_s8 = sshll.u32 %s116_s0, 4  ;;  %s98_s9 = smov [#allocation2]   ;;  %s14_s8 = int_to_ptr.hbm [resolvable:$true] %s13_s8 }
   0x2   :  { %s15_s10 = sshll.u32 %s98_s9, 4  ;;  %s16_s10 = int_to_ptr.vmem [resolvable:$true] %s15_s10 }
   0x3   :  { %18 = dma.hbm_to_vmem [thread:$0]  %s14_s8, 256, %s16_s10, [#allocation3]  }
   0x4   :  { %94 = dma.done.wait [#allocation3], 256  }
   0x5   :  { %95 = vsyncadd [#allocation3], 4294967040  ;;  %s99_s11 = smov [#allocation5]   ;;  %s34_s15 = sshll.u32 %s117_s1, 4  ;;  %v23_v0 = vld [vmem:[#allocation2] sm:$0xff]  ;;  %v24_v1 = vld [vmem:[#allocation2 + $0x8] sm:$0xff]  ;;  %s35_s15 = int_to_ptr.hbm [resolvable:$true] %s34_s15 }
   0x6   :  { %s32_s12 = sshll.u32 %s99_s11, 4  ;;  %25 = vst [vmem:[#allocation5] sm:$0xff] %v23_v0  ;;  %s33_s12 = int_to_ptr.vmem [resolvable:$true] %s32_s12 }
   0x7   :  { %26 = vst [vmem:[#allocation5 + $0x8] sm:$0xff] %v24_v1 }
   0x8   :  { %37 = dma.vmem_to_hbm [thread:$0]  %s33_s12, 256, %s35_s15, [#allocation4]  }
   0x9   :  { %96 = dma.done.wait [#allocation4], 256  }
   0xa   :  { %97 = vsyncadd [#allocation4], 4294967040 }
   0xb   :  { %42 = vsyncpa [#allocation3], 1 }
   0xc   :  { %43 = vsyncpa [#allocation4], 1 }

</bundles_post_ra>
